<compile_context>
chip_gen: v7x
topology: tpu7x:2x2x1
jax: 0.10.0
libtpu: 0.0.40
codegen_flags: <defaults>
</compile_context>

<pallas_src>
import functools

import jax
import jax.numpy as jnp
from jax import lax
from jax.experimental import pallas as pl
from jax.experimental.pallas import tpu as pltpu


def _hier_emb_kernel(idx_ref, *refs, num_levels, num_timesteps):
    """One batch block: vectorized one-hot gather + lane-dense time repeat.

    idx_ref    : VMEM (blk, L) int32  — per-level row indices for this block
    refs[:L]   : VMEM (N_l_pad, D)    — full-resident (zero-padded) tables
    refs[L]    : VMEM (blk, T*L*D)    — lane-dense output tile
    """
    table_refs = refs[:num_levels]
    out_ref = refs[num_levels]

    idx_blk = idx_ref[...]                                   # (blk, L) int32
    blk = idx_blk.shape[0]

    embs = []
    for l in range(num_levels):                              # static, small L
        tbl = table_refs[l][...]                             # (N_l_pad, D)
        n_l = tbl.shape[0]
        # One-hot gather on the MXU: (blk, N_l) @ (N_l, D).  Indices were
        # clamped to the *unpadded* vocab in the wrapper, so zero-padded
        # table rows always get weight 0 and the gather is exact.
        onehot = (idx_blk[:, l:l + 1] ==
                  lax.broadcasted_iota(jnp.int32, (blk, n_l), 1)
                  ).astype(tbl.dtype)                        # (blk, N_l)
        embs.append(jnp.dot(onehot, tbl,
                            preferred_element_type=jnp.float32))

    stacked = jnp.concatenate(embs, axis=-1).astype(out_ref.dtype)  # (blk, L*D)

    # Time repeat: row-major layout of (T, L*D) is T back-to-back copies of
    # the (L*D) row, so the repeat is a single lane concat followed by one
    # wide, unmasked store of the whole (blk, T*L*D) tile.
    out_ref[...] = jnp.concatenate([stacked] * num_timesteps, axis=-1)


def hierarchical_embeddings_block(embedding_idx, tables, num_diffusion_timesteps,
                                  *, block_b=None):
    """JAX/Pallas equivalent of HierarchicalEmbeddingsBlock.forward.

    embedding_idx: list of integer arrays, all the same shape [...]
    tables:        list of (N_l, D) embedding tables (same D and dtype)
    returns:       [..., num_diffusion_timesteps, D * len(tables)]
    """
    L = len(tables)
    assert L == len(embedding_idx) and L > 0
    D = int(tables[0].shape[1])
    dtype = tables[0].dtype
    for t in tables:
        assert int(t.shape[1]) == D and t.dtype == dtype, (
            "all embedding tables must share emb_dim and dtype")
    T = int(num_diffusion_timesteps)

    batch_shape = embedding_idx[0].shape
    for e in embedding_idx:
        assert e.shape == batch_shape, "all index arrays must share a shape"
    B = 1
    for s in batch_shape:
        B *= int(s)
    B = max(B, 1)

    # Clamp (torch.nn.Embedding raises on OOB; here OOB one-hot rows would be
    # silently all-zero, so clamping keeps behaviour defined) and stack the
    # indices into a single (B, L) int32 array consumed as a VMEM block.
    idx2d = jnp.stack(
        [jnp.clip(jnp.reshape(e, (-1,)).astype(jnp.int32), 0, int(t.shape[0]) - 1)
         for e, t in zip(embedding_idx, tables)],
        axis=1)                                              # (B, L)

    # Pad each table's row count to a multiple of 8 (sublane-aligned
    # contraction dim for the one-hot matmul).  Padded rows are zero and
    # never selected (indices are clamped to the original vocab above).
    tables_p = []
    for t in tables:
        n = int(t.shape[0])
        n_pad = ((n + 7) // 8) * 8
        tables_p.append(jnp.pad(t, ((0, n_pad - n), (0, 0))) if n_pad != n else t)

    itemsize = int(jnp.dtype(dtype).itemsize)
    row_bytes = T * L * D * itemsize                         # one output row

    # Per-generation output-tile target: large tiles on 128 MiB-VMEM parts
    # (v5e/v6e), smaller on v7x (64 MiB per TC, 2 TCs share the chip).
    try:
        vmem_cap = int(pltpu.get_tpu_info().vmem_capacity_bytes)
    except Exception:  # conservative fallback
        vmem_cap = 64 << 20
    target_tile_bytes = (8 << 20) if vmem_cap >= (96 << 20) else (3 << 20)

    if block_b is None:
        blk = max(8, target_tile_bytes // row_bytes)
    else:
        blk = int(block_b)
    b_ceil8 = ((B + 7) // 8) * 8
    blk = max(8, min((blk // 8) * 8, b_ceil8))               # sublane-aligned

    num_blocks = int(pl.cdiv(B, blk))
    B_pad = num_blocks * blk
    if B_pad != B:
        # padded rows gather (clamped) row 0 and are sliced off below
        idx2d = jnp.pad(idx2d, ((0, B_pad - B), (0, 0)))

    kernel = functools.partial(_hier_emb_kernel, num_levels=L, num_timesteps=T)

    # Explicit VMEM budget: double-buffered output tile + in-kernel tile
    # value headroom + resident tables (pipeline double-buffers them even
    # with a constant index_map) + index tiles + slack.
    table_bytes = sum(int(t.shape[0]) * D * itemsize for t in tables_p)
    out_tile_bytes = blk * row_bytes
    idx_tile_bytes = blk * L * 4
    vmem_needed = (3 * out_tile_bytes + 2 * table_bytes
                   + 2 * idx_tile_bytes + (2 << 20))
    vmem_limit = int(min(max(vmem_needed, 16 << 20),
                         max(vmem_cap - (8 << 20), 16 << 20)))

    grid_spec = pltpu.PrefetchScalarGridSpec(
        num_scalar_prefetch=0,
        grid=(num_blocks,),
        in_specs=[pl.BlockSpec((blk, L), lambda i: (i, 0))] + [
            # Tables are tiny here -> keep fully resident in VMEM.  For large
            # vocabularies, switch to pipeline_mode=pl.Buffered(1) (or
            # memory_space=pl.ANY + a one-time DMA) to halve the resident
            # footprint on v7x's 64 MiB per-TC VMEM.
            pl.BlockSpec(tuple(int(s) for s in t.shape), lambda i: (0, 0))
            for t in tables_p
        ],
        out_specs=pl.BlockSpec((blk, T * L * D), lambda i: (i, 0)),
    )

    out = pl.pallas_call(
        kernel,
        out_shape=jax.ShapeDtypeStruct((B_pad, T * L * D), dtype),
        grid_spec=grid_spec,
        compiler_params=pltpu.CompilerParams(
            # each batch block writes a disjoint output tile -> legal to
            # shard across TensorCores (v7x); harmless no-op on v5e/v6e.
            dimension_semantics=("parallel",),
            vmem_limit_bytes=vmem_limit,
        ),
    )(idx2d, *tables_p)

    if B_pad != B:
        out = out[:B]
    # (B, T*L*D) -> (..., T, L*D): row-major identical, free reshape.
    return out.reshape(*batch_shape, T, L * D)


def _reference(embedding_idx, tables, T):
    # pure-JAX reference of the PyTorch forward
    embs = [t[e] for t, e in zip(tables, embedding_idx)]     # gathers
    stacked = jnp.concatenate(embs, axis=-1)                 # [..., L*D]
    stacked = jnp.expand_dims(stacked, -2)                   # [..., 1, L*D]
    return jnp.repeat(stacked, T, axis=-2)                   # [..., T, L*D]


if __name__ == "__main__":
    key = jax.random.PRNGKey(0)

    time_embedding_dim = 32
    num_embeddings = (5, 7, 3)          # hierarchy sizes
    num_diffusion_timesteps = 16
    batch = 8

    keys = jax.random.split(key, 2 * len(num_embeddings))
    tables = [
        jax.random.normal(keys[i], (ne, time_embedding_dim), dtype=jnp.float32)
        for i, ne in enumerate(num_embeddings)
    ]
    embedding_idx = [
        jax.random.randint(keys[len(num_embeddings) + i], (batch,), 0, ne)
        for i, ne in enumerate(num_embeddings)
    ]

    out = hierarchical_embeddings_block(
        embedding_idx, tables, num_diffusion_timesteps
    )
    out = jax.block_until_ready(out)

    ref = _reference(embedding_idx, tables, num_diffusion_timesteps)
    assert out.shape == (batch, num_diffusion_timesteps,
                         time_embedding_dim * len(num_embeddings)), out.shape
    assert jnp.allclose(out, ref, atol=1e-6), float(jnp.abs(out - ref).max())

    print("KERNEL_OK")
</pallas_src>

<mosaic_0001>
module attributes {stable_mosaic.version = 11 : i64} {
  func.func @_hier_emb_kernel(%arg0: i32, %arg1: memref<8x3xi32, #tpu.memory_space<vmem>>, %arg2: memref<8x32xf32, #tpu.memory_space<vmem>>, %arg3: memref<8x32xf32, #tpu.memory_space<vmem>>, %arg4: memref<8x32xf32, #tpu.memory_space<vmem>>, %arg5: memref<8x1536xf32, #tpu.memory_space<vmem>>) attributes {dimension_semantics = [#tpu.dimension_semantics<parallel>], iteration_bounds = array<i64: 1>, scalar_prefetch = 0 : i64, scratch_operands = 0 : i64, tpu.core_type = #tpu.core_type<tc>, window_params = [{transform_indices = @transform_0, window_bounds = array<i64: 8, 3>}, {pipeline_mode = #tpu.pipeline_mode<synchronous>, transform_indices = @transform_1, window_bounds = array<i64: 8, 32>}, {pipeline_mode = #tpu.pipeline_mode<synchronous>, transform_indices = @transform_2, window_bounds = array<i64: 8, 32>}, {pipeline_mode = #tpu.pipeline_mode<synchronous>, transform_indices = @transform_3, window_bounds = array<i64: 8, 32>}, {transform_indices = @transform_4, window_bounds = array<i64: 8, 1536>}]} {
    %c0 = arith.constant 0 : index
    %c0_0 = arith.constant 0 : index
    %0 = vector.load %arg1[%c0, %c0_0] : memref<8x3xi32, #tpu.memory_space<vmem>>, vector<8x3xi32>
    %c0_1 = arith.constant 0 : index
    %c0_2 = arith.constant 0 : index
    %1 = vector.load %arg2[%c0_1, %c0_2] : memref<8x32xf32, #tpu.memory_space<vmem>>, vector<8x32xf32>
    %2 = vector.extract_strided_slice %0 {offsets = [0, 0], sizes = [8, 1], strides = [1, 1]} : vector<8x3xi32> to vector<8x1xi32>
    %3 = tpu.iota {dimensions = array<i32: 1>} : vector<8x8xi32>
    %4 = vector.broadcast %2 : vector<8x1xi32> to vector<8x8xi32>
    %5 = arith.cmpi eq, %4, %3 : vector<8x8xi32>
    %6 = arith.extui %5 : vector<8x8xi1> to vector<8x8xi32>
    %7 = arith.sitofp %6 : vector<8x8xi32> to vector<8x8xf32>
    %cst = arith.constant dense<0.000000e+00> : vector<8x32xf32>
    %8 = tpu.matmul %7, %1, %cst {dimension_numbers = #tpu.dot_dimension_numbers<[1], [0], [0], [1], [0, 0, 1, 1], [], []>} : vector<8x8xf32>, vector<8x32xf32>, vector<8x32xf32> -> vector<8x32xf32>
    %c0_3 = arith.constant 0 : index
    %c0_4 = arith.constant 0 : index
    %9 = vector.load %arg3[%c0_3, %c0_4] : memref<8x32xf32, #tpu.memory_space<vmem>>, vector<8x32xf32>
    %10 = vector.extract_strided_slice %0 {offsets = [0, 1], sizes = [8, 1], strides = [1, 1]} : vector<8x3xi32> to vector<8x1xi32>
    %11 = tpu.iota {dimensions = array<i32: 1>} : vector<8x8xi32>
    %12 = vector.broadcast %10 : vector<8x1xi32> to vector<8x8xi32>
    %13 = arith.cmpi eq, %12, %11 : vector<8x8xi32>
    %14 = arith.extui %13 : vector<8x8xi1> to vector<8x8xi32>
    %15 = arith.sitofp %14 : vector<8x8xi32> to vector<8x8xf32>
    %cst_5 = arith.constant dense<0.000000e+00> : vector<8x32xf32>
    %16 = tpu.matmul %15, %9, %cst_5 {dimension_numbers = #tpu.dot_dimension_numbers<[1], [0], [0], [1], [0, 0, 1, 1], [], []>} : vector<8x8xf32>, vector<8x32xf32>, vector<8x32xf32> -> vector<8x32xf32>
    %c0_6 = arith.constant 0 : index
    %c0_7 = arith.constant 0 : index
    %17 = vector.load %arg4[%c0_6, %c0_7] : memref<8x32xf32, #tpu.memory_space<vmem>>, vector<8x32xf32>
    %18 = vector.extract_strided_slice %0 {offsets = [0, 2], sizes = [8, 1], strides = [1, 1]} : vector<8x3xi32> to vector<8x1xi32>
    %19 = tpu.iota {dimensions = array<i32: 1>} : vector<8x8xi32>
    %20 = vector.broadcast %18 : vector<8x1xi32> to vector<8x8xi32>
    %21 = arith.cmpi eq, %20, %19 : vector<8x8xi32>
    %22 = arith.extui %21 : vector<8x8xi1> to vector<8x8xi32>
    %23 = arith.sitofp %22 : vector<8x8xi32> to vector<8x8xf32>
    %cst_8 = arith.constant dense<0.000000e+00> : vector<8x32xf32>
    %24 = tpu.matmul %23, %17, %cst_8 {dimension_numbers = #tpu.dot_dimension_numbers<[1], [0], [0], [1], [0, 0, 1, 1], [], []>} : vector<8x8xf32>, vector<8x32xf32>, vector<8x32xf32> -> vector<8x32xf32>
    %25 = tpu.concatenate %8, %16, %24 in 1 : vector<8x32xf32>, vector<8x32xf32>, vector<8x32xf32> -> vector<8x96xf32>
    %26 = tpu.concatenate %25, %25, %25, %25, %25, %25, %25, %25, %25, %25, %25, %25, %25, %25, %25, %25 in 1 : vector<8x96xf32>, vector<8x96xf32>, vector<8x96xf32>, vector<8x96xf32>, vector<8x96xf32>, vector<8x96xf32>, vector<8x96xf32>, vector<8x96xf32>, vector<8x96xf32>, vector<8x96xf32>, vector<8x96xf32>, vector<8x96xf32>, vector<8x96xf32>, vector<8x96xf32>, vector<8x96xf32>, vector<8x96xf32> -> vector<8x1536xf32>
    %c0_9 = arith.constant 0 : index
    %c0_10 = arith.constant 0 : index
    %27 = vector.load %arg5[%c0_9, %c0_10] : memref<8x1536xf32, #tpu.memory_space<vmem>>, vector<8x1536xf32>
    tpu.vector_store %arg5[%c0_9, %c0_10], %26 {strides = array<i32>} : memref<8x1536xf32, #tpu.memory_space<vmem>>, vector<8x1536xf32>,
    return
  }
  func.func @transform_0(%arg0: i32) -> (i32, i32) {
    %c0_i32 = arith.constant 0 : i32
    %c0_i32_0 = arith.constant 0 : i32
    return %arg0, %c0_i32 : i32, i32
  }
  func.func @transform_1(%arg0: i32) -> (i32, i32) {
    %c0_i32 = arith.constant 0 : i32
    %c0_i32_0 = arith.constant 0 : i32
    %c0_i32_1 = arith.constant 0 : i32
    return %c0_i32, %c0_i32_0 : i32, i32
  }
  func.func @transform_2(%arg0: i32) -> (i32, i32) {
    %c0_i32 = arith.constant 0 : i32
    %c0_i32_0 = arith.constant 0 : i32
    %c0_i32_1 = arith.constant 0 : i32
    return %c0_i32, %c0_i32_0 : i32, i32
  }
  func.func @transform_3(%arg0: i32) -> (i32, i32) {
    %c0_i32 = arith.constant 0 : i32
    %c0_i32_0 = arith.constant 0 : i32
    %c0_i32_1 = arith.constant 0 : i32
    return %c0_i32, %c0_i32_0 : i32, i32
  }
  func.func @transform_4(%arg0: i32) -> (i32, i32) {
    %c0_i32 = arith.constant 0 : i32
    %c0_i32_0 = arith.constant 0 : i32
    return %arg0, %c0_i32 : i32, i32
  }
}

</mosaic_0001>

<bundles_post_ra>
// kernel: tpu_custom_call.1
= control target key start
LH: loop header
LB: loop body
LE: loop exit
PB: predicated region body
PF: predicated region fallthrough
CT: control target
= control target key end

     0   :  { %9 = vsyncpa [#allocation3], 0  ;;  %s489_s0 = inlined_call_operand.vmem [shape: s32[8,3], index: 0, kind: input, shape index: {}]   ;;  %s490_s1 = inlined_call_operand.vmem [shape: f32[8,32], index: 1, kind: input, shape index: {}]   ;;  %s491_s2 = inlined_call_operand.vmem [shape: f32[8,32], index: 2, kind: input, shape index: {}]   ;;  %s492_s3 = inlined_call_operand.hbm [shape: f32[8,32], index: 3, kind: input, shape index: {}]   ;;  %s493_s4 = inlined_call_operand.hbm [shape: f32[8,1536], index: 4, kind: output, shape index: {}]  }
   0x1   :  { %10 = vsyncpa [#allocation4], 0  ;;  %s416_s15 = smov [#allocation2]   ;;  %s368_s19 = scalar_lea.hbm %s492_s3, 128 }
   0x2   :  { %s23_s16 = sshll.u32 %s416_s15, 4  ;;  %p369_p0 = scmp.ne.s32.totalorder %s492_s3, %s368_s19  ;;  %s24_s16 = int_to_ptr.vmem [resolvable:$true] %s23_s16 }
   0x3   :  { %p372_p1 = scmp.lt.u32.totalorder %s368_s19, %s492_s3 }
   0x5   :  { %p374_p2 = pnand %p372_p1, %p369_p0 }
   0x7   :  { %377 = shalt.err (!%p374_p2)
}
   0x8   :  { %s378_s24 = scalar_lea.vmem %s24_s16, 128  ;;  %p383_p4 = scmp.lt.s32.totalorder %s24_s16, %s24_s16 }
   0x9   :  { %p379_p3 = scmp.ne.s32.totalorder %s24_s16, %s378_s24  ;;  %p384_p5 = scmp.lt.s32.totalorder %s378_s24, %s378_s24 }
   0xb   :  { %p385_p6 = por %p384_p5, %p383_p4 }
   0xd   :  { %p386_p7 = pnand %p385_p6, %p379_p3 }
   0xf   :  { %389 = shalt.err (!%p386_p7)
}
  0x10   :  { %26 = dma.hbm_to_vmem [thread:$0]  %s492_s3, 128, %s24_s16, [#allocation3]  }
  0x11   :  { %412 = dma.done.wait [#allocation3], 128  }
  0x12   :  { %413 = vsyncadd [#allocation3], 4294967168  ;;  %v417_v0 = vmov 0   ;;  %v418_v1 = vmov 2   ;;  %v419_v2 = vmov 0.0   ;;  %v30_v3 = vld [vmem:[%s489_s0] sm:$0xff]  ;;  %v32_v7 = vlaneseq }
  0x13   :  { %364 = vset.pattern.permute.xlu0 %v417_v0  ;;  %366 = vset.pattern.permute.xlu1 %v418_v1  ;;  %v31_v4 = vld [vmem:[%s490_s1] sm:$0xff]  ;;  %vm420_vm0 = vmmov 0   ;;  %v421_v5 = vmov 1   ;;  %vm40_vm1 = vcmask 64512   ;;  %v194_v11 = vld [vmem:[#allocation2] sm:$0xff]  ;;  %s422_s0 = smov 32  }
  0x14   :  { %339 = vmatprep.subr.mxu0 %v419_v2  ;;  %344 = vmatprep.subr.mxu1 %v419_v2  ;;  %v114_v6 = vld [vmem:[%s491_s2] sm:$0xff]  ;;  %v33_v8 = vand.u32 127, %v32_v7  ;;  %s423_s1 = smov 64   ;;  %vm282_vm5 = vcmask 261120   ;;  %vm284_vm6 = vcmask 523264   ;;  %s424_s2 = smov 96  }
  0x15   :  { %35 = vperm.xlu0 %364, %v30_v3   ;;  %196 = vperm.xlu1 %366, %v30_v3   ;;  %vm296_vm7 = vcmask 785408   ;;  %s425_s6 = smov [#allocation5]  }
  0x16   :  { %340 = vmatpush3.msra.mxu0 %v31_v4  ;;  %341 = vmatprep.mubr.msk.f32.mxu0 %vm420_vm0, %v419_v2  ;;  %s318_s7 = sshll.u32 %s425_s6, 4  ;;  %s319_s7 = int_to_ptr.vmem [resolvable:$true] %s318_s7 }
  0x17   :  { %346 = vmatprep.mubr.msk.f32.mxu1 %vm420_vm0, %v419_v2  ;;  %349 = vmatprep.subr.mxu0 %v419_v2  ;;  %s390_s8 = scalar_lea.vmem %s319_s7, 1536  ;;  %p395_p9 = scmp.lt.s32.totalorder %s319_s7, %s319_s7 }
  0x18   :  { %345 = vmatpush3.msra.mxu1 %v114_v6  ;;  %p391_p8 = scmp.ne.s32.totalorder %s319_s7, %s390_s8  ;;  %p396_p10 = scmp.lt.s32.totalorder %s390_s8, %s390_s8 }
  0x19   :  { %365 = vset.pattern.permute.xlu0 %v421_v5 }
  0x1a   :  { %116 = vperm.xlu0 %365, %v30_v3   ;;  %p397_p11 = por %p396_p10, %p395_p9 }
  0x1c   :  { %p398_p12 = pnand %p397_p11, %p391_p8 }
  0x1e   :  { %367 = vset.pattern.permute.xlu0 %v418_v1 }
  0x94   :  { %v36_v9 = vpop.permute.xlu0 %35  ;;  %v197_v10 = vpop.permute.xlu1 %196 }
  0x95   :  { %vm37_vm2 = vcmp.eq.s32.totalorder %v36_v9, %v33_v8  ;;  %vm198_vm3 = vcmp.eq.s32.totalorder %v197_v10, %v33_v8 }
  0x96   :  { %v327_v12 = vsel %vm37_vm2, 1.0, %v419_v2  ;;  %v331_v13 = vsel %vm198_vm3, 1.0, %v419_v2 }
  0x97   :  { %342 = vmatmul.mubr.msk.f32.vlgmr.msra.gmra.mrb[0].mxu0 %vm40_vm1, %v327_v12 }
  0x98   :  { %350 = vmatpush3.msra.mxu0 %v194_v11  ;;  %351 = vmatprep.mubr.msk.f32.mxu0 %vm420_vm0, %v419_v2 }
  0x99   :  { %v117_v14 = vpop.permute.xlu0 %116 }
  0x9a   :  { %vm118_vm4 = vcmp.eq.s32.totalorder %v117_v14, %v33_v8 }
  0x9b   :  { %v329_v15 = vsel %vm118_vm4, 1.0, %v419_v2  ;;  %352 = vmatmul.mubr.msk.f32.vlgmr.msra.gmra.mrb[2].mxu0 %vm40_vm1, %v331_v13 }
  0x9c   :  { %347 = vmatmul.mubr.msk.f32.vlgmr.msra.gmra.mrb[0].mxu1 %vm40_vm1, %v329_v15 }
 0x16a   :  { %v110_v16 = vpop.f32.mrb[0].mxu0 }
 0x16b   :  { %v343_v17 = vpop.f32.mrb[1].mxu0 }
 0x16e   :  { %v270_v18 = vpop.f32.mrb[2].mxu0 }
 0x16f   :  { %v190_v19 = vpop.f32.mrb[0].mxu1  ;;  %v353_v20 = vpop.f32.mrb[3].mxu0 }
 0x170   :  { %275 = vrot.lane.b32.xlu1 %v190_v19, %s422_s0  ;;  %v348_v21 = vpop.f32.mrb[1].mxu1 }
 0x174   :  { %279 = vrot.lane.b32.xlu1 %v270_v18, %s423_s1 }
 0x1e2   :  { %v276_v22 = vpop.permute.xlu1 %275 }
 0x1e3   :  { %v283_v23 = vsel %vm282_vm5, %v110_v16, %v276_v22 }
 0x1e6   :  { %v280_v24 = vpop.permute.xlu1 %279 }
 0x1e7   :  { %v285_v25 = vsel %vm284_vm6, %v283_v23, %v280_v24 }
 0x1e8   :  { %290 = vrot.lane.b32.xlu1 %v285_v25, %s423_s1  ;;  %287 = vrot.lane.b32.xlu0 %v285_v25, %s424_s2 }
 0x1ec   :  { %293 = vrot.lane.b32.xlu0 %v285_v25, %s422_s0 }
 0x25a   :  { %v291_v26 = vpop.permute.xlu1 %290  ;;  %v288_v27 = vpop.permute.xlu0 %287 }
 0x25b   :  { %v297_v28 = vsel %vm296_vm7, %v285_v25, %v288_v27  ;;  %v298_v29 = vsel %vm284_vm6, %v288_v27, %v291_v26 }
 0x25c   :  { %300 = vst [vmem:[#allocation5] sm:$0xff] %v297_v28  ;;  %301 = vst [vmem:[#allocation5 + $0x8] sm:$0xff] %v298_v29 }
 0x25d   :  { %303 = vst [vmem:[#allocation5 + $0x18] sm:$0xff] %v297_v28  ;;  %304 = vst [vmem:[#allocation5 + $0x20] sm:$0xff] %v298_v29 }
 0x25e   :  { %306 = vst [vmem:[#allocation5 + $0x30] sm:$0xff] %v297_v28  ;;  %307 = vst [vmem:[#allocation5 + $0x38] sm:$0xff] %v298_v29  ;;  %v294_v30 = vpop.permute.xlu0 %293 }
 0x25f   :  { %309 = vst [vmem:[#allocation5 + $0x48] sm:$0xff] %v297_v28  ;;  %310 = vst [vmem:[#allocation5 + $0x50] sm:$0xff] %v298_v29  ;;  %v299_v31 = vsel %vm282_vm5, %v291_v26, %v294_v30 }
 0x260   :  { %302 = vst [vmem:[#allocation5 + $0x10] sm:$0xff] %v299_v31  ;;  %305 = vst [vmem:[#allocation5 + $0x28] sm:$0xff] %v299_v31 }
 0x261   :  { %308 = vst [vmem:[#allocation5 + $0x40] sm:$0xff] %v299_v31  ;;  %311 = vst [vmem:[#allocation5 + $0x58] sm:$0xff] %v299_v31 }
 0x262   :  { %401 = shalt.err (!%p398_p12)
}
 0x263   :  { %s402_s11 = scalar_lea.hbm %s493_s4, 1536 }
 0x264   :  { %p403_p13 = scmp.ne.s32.totalorder %s493_s4, %s402_s11  ;;  %p406_p0 = scmp.lt.u32.totalorder %s402_s11, %s493_s4 }
 0x266   :  { %p408_p1 = pnand %p406_p0, %p403_p13 }
 0x268   :  { %411 = shalt.err (!%p408_p1)
}
 0x269   :  { %321 = dma.vmem_to_hbm [thread:$0]  %s319_s7, 1536, %s493_s4, [#allocation4]  }
 0x26a   :  { %414 = dma.done.wait [#allocation4], 1536  }
 0x26b   :  { %415 = vsyncadd [#allocation4], 4294965760 }
 0x26c   :  { %325 = vsyncpa [#allocation3], 1 }
 0x26d   :  { %326 = vsyncpa [#allocation4], 1 }

</bundles_post_ra>
